<compile_context>
chip_gen: v6e
topology: v6e:2x2x1
jax: 0.10.0
libtpu: 0.0.40
codegen_flags: <defaults>
</compile_context>

<pallas_src>
import functools
import math

import jax
import jax.numpy as jnp
from jax.experimental import pallas as pl
from jax.experimental.pallas import tpu as pltpu

IMAGENET_DEFAULT_MEAN = (0.485, 0.456, 0.406)
IMAGENET_DEFAULT_STD = (0.229, 0.224, 0.225)


def _transform_kernel(num_channels, scale_ref, bias_ref, img_ref, ry_ref, rxt_ref, out_ref):
    """One image per grid step: crop/resize/flip as two bf16 MXU matmuls per
    channel (statically unrolled) + fused ToTensor/Normalize epilogue (VPU)."""
    ry = ry_ref[...]                       # (S, H)   bf16
    rxt = rxt_ref[...]                     # (W, Sp)  bf16 (Sp lane-dense)
    for c in range(num_channels):          # static unroll: channels overlap in the VLIW schedule
        # uint8 -> f32 on the VPU (keeps input DMA at 1 byte/pixel), bf16 for the MXU.
        img_c = img_ref[c].astype(jnp.float32).astype(jnp.bfloat16)      # (H, W)
        tmp = jnp.dot(ry, img_c, preferred_element_type=jnp.float32)     # (S, W) f32
        res = jnp.dot(tmp.astype(jnp.bfloat16), rxt,
                      preferred_element_type=jnp.float32)                # (S, Sp) f32
        # (x/255 - mean)/std  ==  x*scale_c + bias_c, per-channel SMEM scalars.
        out_ref[c] = res * scale_ref[c] + bias_ref[c]


def _interp_matrix(start, length, in_size, out_size):
    """Dense (out_size, in_size) bilinear sampling matrix for a crop window
    [start, start+length) resized to out_size (half-pixel centers, no antialias)."""
    # TODO(synk): PIL/torchvision applies antialiasing for strong downscales; this
    # 2-tap bilinear matrix does not.
    ys = jnp.arange(out_size, dtype=jnp.float32)
    src = start + (ys + 0.5) * (length / out_size) - 0.5
    src = jnp.clip(src, start, start + length - 1.0)
    src = jnp.clip(src, 0.0, float(in_size - 1))
    i0f = jnp.floor(src)
    frac = src - i0f
    i0 = i0f.astype(jnp.int32)
    i1 = jnp.minimum(i0 + 1, in_size - 1)
    cols = jnp.arange(in_size, dtype=jnp.int32)[None, :]
    m = ((cols == i0[:, None]).astype(jnp.float32) * (1.0 - frac)[:, None]
         + (cols == i1[:, None]).astype(jnp.float32) * frac[:, None])
    return m  # (out_size, in_size) float32


def _crop_matrices(key, H, W, img_size, out_pad, min_ratio, scale_range=(0.08, 1.0)):
    """Sample RandomResizedCrop + RandomHorizontalFlip params for one image and
    return the bf16 resampling matrices Ry (S, H) and RxT (W, Sp)."""
    k_area, k_ratio, k_i, k_j, k_flip = jax.random.split(key, 5)
    area = float(H * W)
    target_area = jax.random.uniform(
        k_area, (), minval=scale_range[0], maxval=scale_range[1]) * area
    # min_ratio is a static Python float -> use math.log (NOT jnp.log + float()).
    log_ratio = jax.random.uniform(k_ratio, (), minval=math.log(min_ratio), maxval=0.0)
    aspect = jnp.exp(log_ratio)
    w = jnp.round(jnp.sqrt(target_area * aspect))
    h = jnp.round(jnp.sqrt(target_area / aspect))
    # TODO(synk): torchvision retries the (h, w) sample up to 10x then falls back to
    # a center crop; here we clamp the single sample to the image bounds.
    w = jnp.clip(w, 1.0, float(W))
    h = jnp.clip(h, 1.0, float(H))
    i = jnp.clip(jnp.floor(jax.random.uniform(k_i, ()) * (H - h + 1.0)), 0.0, H - h)
    j = jnp.clip(jnp.floor(jax.random.uniform(k_j, ()) * (W - w + 1.0)), 0.0, W - w)
    flip = jax.random.bernoulli(k_flip, 0.5)

    ry = _interp_matrix(i, h, H, img_size)                # (S, H) row resampling
    rx = _interp_matrix(j, w, W, img_size)                # (S, W) col resampling
    rx = jnp.where(flip, rx[::-1, :], rx)                 # horizontal flip of output cols
    rx = jnp.pad(rx, ((0, out_pad - img_size), (0, 0)))   # lane-dense output padding
    return ry.astype(jnp.bfloat16), jnp.transpose(rx).astype(jnp.bfloat16)  # (S,H), (W,Sp)


@functools.partial(jax.jit, static_argnames=("img_size", "min_ratio"))
def downstream_train_transform_batch(samples_u8, keys, img_size=224, min_ratio=0.08):
    """Batched forward of DownstreamClassificationTrainTransform.

    samples_u8: (N, H, W, C) uint8 "PIL" images.  keys: (N,) PRNG keys.
    Returns (N, C, img_size, img_size) float32 normalized CHW tensors.
    """
    N, H, W, C = samples_u8.shape
    S = img_size
    Sp = ((S + 127) // 128) * 128   # lane-dense output width -> unmasked stores

    # Per-image crop/flip resampling matrices (vmapped host-side glue, bf16).
    ry, rxt = jax.vmap(
        lambda k: _crop_matrices(k, H, W, S, Sp, min_ratio))(keys)   # (N,S,H), (N,W,Sp)

    # HWC uint8 -> CHW uint8 (no f32 materialization in HBM; 1 byte/pixel DMA).
    imgs = jnp.transpose(samples_u8, (0, 3, 1, 2))                   # (N, C, H, W) uint8

    mean = jnp.asarray(IMAGENET_DEFAULT_MEAN, dtype=jnp.float32)
    inv_std = 1.0 / jnp.asarray(IMAGENET_DEFAULT_STD, dtype=jnp.float32)
    scale = inv_std / 255.0          # folds ToTensor's /255 into Normalize
    bias = -mean * inv_std

    kernel = functools.partial(_transform_kernel, C)
    out_padded = pl.pallas_call(
        kernel,
        out_shape=jax.ShapeDtypeStruct((N, C, S, Sp), jnp.float32),
        grid_spec=pltpu.PrefetchScalarGridSpec(
            num_scalar_prefetch=2,                        # scale, bias -> SMEM
            grid=(N,),                                    # one image per grid step
            in_specs=[
                pl.BlockSpec((None, C, H, W), lambda n, *_: (n, 0, 0, 0)),   # uint8 image
                pl.BlockSpec((None, S, H), lambda n, *_: (n, 0, 0)),         # Ry (bf16)
                pl.BlockSpec((None, W, Sp), lambda n, *_: (n, 0, 0)),        # RxT (bf16)
            ],
            out_specs=pl.BlockSpec((None, C, S, Sp), lambda n, *_: (n, 0, 0, 0)),
        ),
        compiler_params=pltpu.CompilerParams(
            dimension_semantics=("parallel",)),           # batch split across TCs (v7x megacore)
    )(scale, bias, imgs, ry, rxt)
    return out_padded[..., :S]


def downstream_train_transform(sample_u8, key, img_size=224, min_ratio=0.08):
    """Single-image convenience wrapper (HWC uint8 -> CHW float32)."""
    out = downstream_train_transform_batch(
        sample_u8[None], key[None], img_size=img_size, min_ratio=min_ratio)
    return out[0]


if __name__ == "__main__":
    key = jax.random.PRNGKey(0)
    k_img, k_aug = jax.random.split(key)

    N = 2               # small batch: amortizes launch cost, gives megacore balanced work
    H = W = 16          # small synthetic "PIL" image
    IMG_SIZE = 16       # small stand-in for the 224 default

    samples = jax.random.randint(
        k_img, (N, H, W, 3), 0, 256, dtype=jnp.int32).astype(jnp.uint8)
    keys = jax.random.split(k_aug, N)

    out = downstream_train_transform_batch(samples, keys, img_size=IMG_SIZE, min_ratio=0.08)
    out = jax.block_until_ready(out)

    assert out.shape == (N, 3, IMG_SIZE, IMG_SIZE), out.shape
    assert out.dtype == jnp.float32, out.dtype
    assert bool(jnp.all(jnp.isfinite(out)))
    print("KERNEL_OK")
</pallas_src>

<mosaic_0001>
module attributes {stable_mosaic.version = 11 : i64} {
  func.func @_transform_kernel(%arg0: i32, %arg1: memref<3xf32, #tpu.memory_space<smem>>, %arg2: memref<3xf32, #tpu.memory_space<smem>>, %arg3: memref<1x3x16x16xi8, #tpu.memory_space<vmem>>, %arg4: memref<1x16x16xbf16, #tpu.memory_space<vmem>>, %arg5: memref<1x16x128xbf16, #tpu.memory_space<vmem>>, %arg6: memref<1x3x16x128xf32, #tpu.memory_space<vmem>>) attributes {dimension_semantics = [#tpu.dimension_semantics<parallel>], iteration_bounds = array<i64: 2>, scalar_prefetch = 2 : i64, scratch_operands = 0 : i64, tpu.core_type = #tpu.core_type<tc>, window_params = [{transform_indices = @transform_0, window_bounds = array<i64: 1, 3, 16, 16>}, {transform_indices = @transform_1, window_bounds = array<i64: 1, 16, 16>}, {transform_indices = @transform_2, window_bounds = array<i64: 1, 16, 128>}, {transform_indices = @transform_3, window_bounds = array<i64: 1, 3, 16, 128>}]} {
    %c0 = arith.constant 0 : index
    %c0_0 = arith.constant 0 : index
    %c0_1 = arith.constant 0 : index
    %0 = vector.load %arg4[%c0, %c0_0, %c0_1] : memref<1x16x16xbf16, #tpu.memory_space<vmem>>, vector<1x16x16xbf16>
    %1 = vector.shape_cast %0 : vector<1x16x16xbf16> to vector<16x16xbf16>
    %c0_2 = arith.constant 0 : index
    %c0_3 = arith.constant 0 : index
    %c0_4 = arith.constant 0 : index
    %2 = vector.load %arg5[%c0_2, %c0_3, %c0_4] : memref<1x16x128xbf16, #tpu.memory_space<vmem>>, vector<1x16x128xbf16>
    %3 = vector.shape_cast %2 : vector<1x16x128xbf16> to vector<16x128xbf16>
    %c0_5 = arith.constant 0 : index
    %c0_6 = arith.constant 0 : index
    %c0_7 = arith.constant 0 : index
    %c0_8 = arith.constant 0 : index
    %4 = vector.load %arg3[%c0_5, %c0_6, %c0_7, %c0_8] : memref<1x3x16x16xi8, #tpu.memory_space<vmem>>, vector<1x1x16x16xi8>
    %5 = vector.shape_cast %4 : vector<1x1x16x16xi8> to vector<16x16xi8>
    %6 = arith.uitofp %5 : vector<16x16xi8> to vector<16x16xf32>
    %7 = arith.truncf %6 : vector<16x16xf32> to vector<16x16xbf16>
    %cst = arith.constant dense<0.000000e+00> : vector<16x16xf32>
    %8 = tpu.matmul %1, %7, %cst {dimension_numbers = #tpu.dot_dimension_numbers<[1], [0], [0], [1], [0, 0, 1, 1], [], []>} : vector<16x16xbf16>, vector<16x16xbf16>, vector<16x16xf32> -> vector<16x16xf32>
    %9 = arith.truncf %8 : vector<16x16xf32> to vector<16x16xbf16>
    %cst_9 = arith.constant dense<0.000000e+00> : vector<16x128xf32>
    %10 = tpu.matmul %9, %3, %cst_9 {dimension_numbers = #tpu.dot_dimension_numbers<[1], [0], [0], [1], [0, 0, 1, 1], [], []>} : vector<16x16xbf16>, vector<16x128xbf16>, vector<16x128xf32> -> vector<16x128xf32>
    %c0_10 = arith.constant 0 : index
    %11 = memref.load %arg1[%c0_10] : memref<3xf32, #tpu.memory_space<smem>>
    %12 = vector.broadcast %11 : f32 to vector<16x128xf32>
    %13 = arith.mulf %10, %12 : vector<16x128xf32>
    %c0_11 = arith.constant 0 : index
    %14 = memref.load %arg2[%c0_11] : memref<3xf32, #tpu.memory_space<smem>>
    %15 = vector.broadcast %14 : f32 to vector<16x128xf32>
    %16 = arith.addf %13, %15 : vector<16x128xf32>
    %c0_12 = arith.constant 0 : index
    %c0_13 = arith.constant 0 : index
    %c0_14 = arith.constant 0 : index
    %c0_15 = arith.constant 0 : index
    %17 = vector.load %arg6[%c0_12, %c0_13, %c0_14, %c0_15] : memref<1x3x16x128xf32, #tpu.memory_space<vmem>>, vector<1x1x16x128xf32>
    %18 = vector.shape_cast %17 : vector<1x1x16x128xf32> to vector<16x128xf32>
    %19 = vector.shape_cast %16 : vector<16x128xf32> to vector<1x1x16x128xf32>
    tpu.vector_store %arg6[%c0_12, %c0_13, %c0_14, %c0_15], %19 {strides = array<i32>} : memref<1x3x16x128xf32, #tpu.memory_space<vmem>>, vector<1x1x16x128xf32>,
    %c0_16 = arith.constant 0 : index
    %c1 = arith.constant 1 : index
    %c0_17 = arith.constant 0 : index
    %c0_18 = arith.constant 0 : index
    %20 = vector.load %arg3[%c0_16, %c1, %c0_17, %c0_18] : memref<1x3x16x16xi8, #tpu.memory_space<vmem>>, vector<1x1x16x16xi8>
    %21 = vector.shape_cast %20 : vector<1x1x16x16xi8> to vector<16x16xi8>
    %22 = arith.uitofp %21 : vector<16x16xi8> to vector<16x16xf32>
    %23 = arith.truncf %22 : vector<16x16xf32> to vector<16x16xbf16>
    %cst_19 = arith.constant dense<0.000000e+00> : vector<16x16xf32>
    %24 = tpu.matmul %1, %23, %cst_19 {dimension_numbers = #tpu.dot_dimension_numbers<[1], [0], [0], [1], [0, 0, 1, 1], [], []>} : vector<16x16xbf16>, vector<16x16xbf16>, vector<16x16xf32> -> vector<16x16xf32>
    %25 = arith.truncf %24 : vector<16x16xf32> to vector<16x16xbf16>
    %cst_20 = arith.constant dense<0.000000e+00> : vector<16x128xf32>
    %26 = tpu.matmul %25, %3, %cst_20 {dimension_numbers = #tpu.dot_dimension_numbers<[1], [0], [0], [1], [0, 0, 1, 1], [], []>} : vector<16x16xbf16>, vector<16x128xbf16>, vector<16x128xf32> -> vector<16x128xf32>
    %c1_21 = arith.constant 1 : index
    %27 = memref.load %arg1[%c1_21] : memref<3xf32, #tpu.memory_space<smem>>
    %28 = vector.broadcast %27 : f32 to vector<16x128xf32>
    %29 = arith.mulf %26, %28 : vector<16x128xf32>
    %c1_22 = arith.constant 1 : index
    %30 = memref.load %arg2[%c1_22] : memref<3xf32, #tpu.memory_space<smem>>
    %31 = vector.broadcast %30 : f32 to vector<16x128xf32>
    %32 = arith.addf %29, %31 : vector<16x128xf32>
    %c0_23 = arith.constant 0 : index
    %c1_24 = arith.constant 1 : index
    %c0_25 = arith.constant 0 : index
    %c0_26 = arith.constant 0 : index
    %33 = vector.load %arg6[%c0_23, %c1_24, %c0_25, %c0_26] : memref<1x3x16x128xf32, #tpu.memory_space<vmem>>, vector<1x1x16x128xf32>
    %34 = vector.shape_cast %33 : vector<1x1x16x128xf32> to vector<16x128xf32>
    %35 = vector.shape_cast %32 : vector<16x128xf32> to vector<1x1x16x128xf32>
    tpu.vector_store %arg6[%c0_23, %c1_24, %c0_25, %c0_26], %35 {strides = array<i32>} : memref<1x3x16x128xf32, #tpu.memory_space<vmem>>, vector<1x1x16x128xf32>,
    %c0_27 = arith.constant 0 : index
    %c2 = arith.constant 2 : index
    %c0_28 = arith.constant 0 : index
    %c0_29 = arith.constant 0 : index
    %36 = vector.load %arg3[%c0_27, %c2, %c0_28, %c0_29] : memref<1x3x16x16xi8, #tpu.memory_space<vmem>>, vector<1x1x16x16xi8>
    %37 = vector.shape_cast %36 : vector<1x1x16x16xi8> to vector<16x16xi8>
    %38 = arith.uitofp %37 : vector<16x16xi8> to vector<16x16xf32>
    %39 = arith.truncf %38 : vector<16x16xf32> to vector<16x16xbf16>
    %cst_30 = arith.constant dense<0.000000e+00> : vector<16x16xf32>
    %40 = tpu.matmul %1, %39, %cst_30 {dimension_numbers = #tpu.dot_dimension_numbers<[1], [0], [0], [1], [0, 0, 1, 1], [], []>} : vector<16x16xbf16>, vector<16x16xbf16>, vector<16x16xf32> -> vector<16x16xf32>
    %41 = arith.truncf %40 : vector<16x16xf32> to vector<16x16xbf16>
    %cst_31 = arith.constant dense<0.000000e+00> : vector<16x128xf32>
    %42 = tpu.matmul %41, %3, %cst_31 {dimension_numbers = #tpu.dot_dimension_numbers<[1], [0], [0], [1], [0, 0, 1, 1], [], []>} : vector<16x16xbf16>, vector<16x128xbf16>, vector<16x128xf32> -> vector<16x128xf32>
    %c2_32 = arith.constant 2 : index
    %43 = memref.load %arg1[%c2_32] : memref<3xf32, #tpu.memory_space<smem>>
    %44 = vector.broadcast %43 : f32 to vector<16x128xf32>
    %45 = arith.mulf %42, %44 : vector<16x128xf32>
    %c2_33 = arith.constant 2 : index
    %46 = memref.load %arg2[%c2_33] : memref<3xf32, #tpu.memory_space<smem>>
    %47 = vector.broadcast %46 : f32 to vector<16x128xf32>
    %48 = arith.addf %45, %47 : vector<16x128xf32>
    %c0_34 = arith.constant 0 : index
    %c2_35 = arith.constant 2 : index
    %c0_36 = arith.constant 0 : index
    %c0_37 = arith.constant 0 : index
    %49 = vector.load %arg6[%c0_34, %c2_35, %c0_36, %c0_37] : memref<1x3x16x128xf32, #tpu.memory_space<vmem>>, vector<1x1x16x128xf32>
    %50 = vector.shape_cast %49 : vector<1x1x16x128xf32> to vector<16x128xf32>
    %51 = vector.shape_cast %48 : vector<16x128xf32> to vector<1x1x16x128xf32>
    tpu.vector_store %arg6[%c0_34, %c2_35, %c0_36, %c0_37], %51 {strides = array<i32>} : memref<1x3x16x128xf32, #tpu.memory_space<vmem>>, vector<1x1x16x128xf32>,
    return
  }
  func.func @transform_0(%arg0: i32, %arg1: memref<3xf32, #tpu.memory_space<smem>>, %arg2: memref<3xf32, #tpu.memory_space<smem>>) -> (i32, i32, i32, i32) {
    %c0_i32 = arith.constant 0 : i32
    %c0_i32_0 = arith.constant 0 : i32
    %c0_i32_1 = arith.constant 0 : i32
    %c0_i32_2 = arith.constant 0 : i32
    return %arg0, %c0_i32, %c0_i32_0, %c0_i32_1 : i32, i32, i32, i32
  }
  func.func @transform_1(%arg0: i32, %arg1: memref<3xf32, #tpu.memory_space<smem>>, %arg2: memref<3xf32, #tpu.memory_space<smem>>) -> (i32, i32, i32) {
    %c0_i32 = arith.constant 0 : i32
    %c0_i32_0 = arith.constant 0 : i32
    %c0_i32_1 = arith.constant 0 : i32
    return %arg0, %c0_i32, %c0_i32_0 : i32, i32, i32
  }
  func.func @transform_2(%arg0: i32, %arg1: memref<3xf32, #tpu.memory_space<smem>>, %arg2: memref<3xf32, #tpu.memory_space<smem>>) -> (i32, i32, i32) {
    %c0_i32 = arith.constant 0 : i32
    %c0_i32_0 = arith.constant 0 : i32
    %c0_i32_1 = arith.constant 0 : i32
    return %arg0, %c0_i32, %c0_i32_0 : i32, i32, i32
  }
  func.func @transform_3(%arg0: i32, %arg1: memref<3xf32, #tpu.memory_space<smem>>, %arg2: memref<3xf32, #tpu.memory_space<smem>>) -> (i32, i32, i32, i32) {
    %c0_i32 = arith.constant 0 : i32
    %c0_i32_0 = arith.constant 0 : i32
    %c0_i32_1 = arith.constant 0 : i32
    %c0_i32_2 = arith.constant 0 : i32
    return %arg0, %c0_i32, %c0_i32_0, %c0_i32_1 : i32, i32, i32, i32
  }
}

</mosaic_0001>

<bundles_post_ra>
// kernel: downstream_train_transform_batch.1
= control target key start
LH: loop header
LB: loop body
LE: loop exit
PB: predicated region body
PF: predicated region fallthrough
CT: control target
= control target key end

     0   :  { %s1070_s0 = inlined_call_operand.vmem [shape: f32[3], index: 0, kind: input, shape index: {}]   ;;  %s1071_s2 = inlined_call_operand.vmem [shape: u8[2,3,16,16], index: 2, kind: input, shape index: {}]   ;;  %s1072_s3 = inlined_call_operand.vmem [shape: bf16[2,16,16], index: 3, kind: input, shape index: {}]   ;;  %s1073_s4 = inlined_call_operand.vmem [shape: bf16[2,16,128], index: 4, kind: input, shape index: {}]   ;;  %s1074_s5 = inlined_call_operand.hbm [shape: f32[2,3,16,128], index: 5, kind: output, shape index: {}]   ;;  %s1075_s1 = inlined_call_operand.vmem [shape: f32[3], index: 1, kind: input, shape index: {}]  }
   0x1   :  { %s10_s20 = sshll.u32 %s1070_s0, 4  ;;  %s14_s23 = sshll.u32 %s1075_s1, 4  ;;  %s11_s20 = int_to_ptr.vmem [resolvable:$true] %s10_s20  ;;  %s15_s23 = int_to_ptr.vmem [resolvable:$true] %s14_s23 }
   0x2   :  { %s798_s24 = scalar_lea.vmem %s11_s20, 16  ;;  %p803_p1 = scmp.lt.s32.totalorder %s11_s20, %s11_s20 }
   0x3   :  { %p799_p0 = scmp.ne.s32.totalorder %s11_s20, %s798_s24  ;;  %p804_p2 = scmp.lt.s32.totalorder %s798_s24, %s798_s24 }
   0x5   :  { %p805_p3 = por %p804_p2, %p803_p1 }
   0x7   :  { %p806_p4 = pnand %p805_p3, %p799_p0 }
   0x9   :  { %809 = shalt.err (!%p806_p4)  }
   0xa   :  { %s886_s25 = smov [#allocation3]   ;;  %s810_s26 = scalar_lea.vmem %s15_s23, 16 }
   0xb   :  { %13 = dma.vmem_to_smem %s11_s20, 16, %s886_s25, [#allocation2] }
   0xc   :  { %p811_p5 = scmp.ne.s32.totalorder %s15_s23, %s810_s26  ;;  %p815_p6 = scmp.lt.s32.totalorder %s15_s23, %s15_s23 }
   0xd   :  { %p816_p7 = scmp.lt.s32.totalorder %s810_s26, %s810_s26 }
   0xf   :  { %p817_p8 = por %p816_p7, %p815_p6 }
  0x11   :  { %p818_p9 = pnand %p817_p8, %p811_p5 }
  0x13   :  { %821 = shalt.err (!%p818_p9)  }
  0x14   :  { %s887_s0 = smov [#allocation4]  }
  0x15   :  { %17 = dma.vmem_to_smem %s15_s23, 16, %s887_s0, [#allocation2] }
  0x16   :  { %864 = dma.done.wait [#allocation2], 32 }
  0x17   :  { %865 = vsyncadd [#allocation2], 4294967264 }
  0x18   :  { %19 = sfence }
  0x19   :  { %20 = vsyncpa [#allocation6], 0 }
  0x1a   :  { %22 = vsyncpa [#allocation6 + $0x1], 0  ;;  %s929_s1 = smov 0   ;;  %s931_s27 = smov 0  }
  0x1b   :  { %s933_s28 = smov 0   ;;  %s935_s29 = smov 0  }
  0x1c LB: > { %s950_s30 = sadd.s32 4294967295, %s884_s29   ;;  %s663_s6 = sadd.s32 4294967294, %s884_s29   ;;  %s884_s29 = sphi %s935_s29, %s1081_s29   ;;  %s880_s28 = sphi %s933_s28, %s1080_s28   ;;  %s876_s27 = sphi %s931_s27, %s1079_s27   ;;  %s872_s1 = sphi %s929_s1, %s1078_s1  }
  0x1d   : > { %s954_s7 = sadd.s32 1, %s884_s29   ;;  %s113_s8 = sadd.s32 1, %s880_s28 }
  0x1e   : > { %s110_s9 = ssub.s32 %s884_s29, %s954_s7  ;;  %p123_p10 = scmp.ne.s32.totalorder %s880_s28, %s876_s27 }
  0x1f   : > { %p111_p11 = scmp.eq.s32.totalorder %s110_s9, 0  ;;  %p124_p12 = scmp.eq.s32.totalorder %s950_s30, 1 }
  0x20   : > { %p129_p13 = scmp.ne.s32.totalorder %s876_s27, %s872_s1  ;;  %p130_p0 = scmp.eq.s32.totalorder %s663_s6, 1 }
  0x21   : > { %s965_s10 = scalar_select %p111_p11, %s880_s28, %s113_s8  }
  0x22   : > { %p967_p1 = por %p124_p12, %p123_p10  ;;  %p971_p2 = por %p130_p0, %p129_p13 }
  0x23   : > { %p666_p3 = scmp.ge.s32.totalorder %s884_s29, 1  ;;  %p172_p4 = scmp.lt.s32.totalorder %s884_s29, 3 }
  0x25   : > { %p173_p5 = pnand %p666_p3, %p172_p4 }
  0x26   : > { %p206_p6 = scmp.lt.s32.totalorder (!%p173_p5), %s950_s30, 1  ;;  %s337_s25 = sld [smem:[#allocation3]] (!%p173_p5) }
  0x27   : > { %176 = sbr.rel (%p173_p5) target bundleno = 487 (0x1e7), region = 32  ;;  %s341_s26 = sld [smem:[#allocation4]] (!%p173_p5) }
  0x28   : > { %s203_s0 = sand.u32 (!%p173_p5), 1, %s876_s27   ;;  %s682_s8 = sld [smem:[#allocation3 + $0x1]] (!%p173_p5) }
  0x29   : > { %s748_s6 = smul.u32 (!%p173_p5), 48, %s203_s0  ;;  %s683_s9 = sld [smem:[#allocation4 + $0x1]] (!%p173_p5) }
  0x2a   : > { %s750_s16 = smul.u32 (!%p173_p5), 768, %s950_s30  ;;  %s890_s22 = smov (!%p173_p5), [#allocation5]  }
  0x2b   : > { %s826_s23 = sshll.u32 (!%p173_p5), %s890_s22, 4  ;;  %s827_s23 = int_to_ptr.vmem [resolvable:$false] %s826_s23 }
  0x2c   : > { %v888_v0 = vmov 0.0   ;;  %vm889_vm0 = vmmov 0   ;;  %s980_s13 = scalar_select %p206_p6, %s950_s30, 1  ;;  %vm241_vm1 = vcmask 130048   ;;  %v338_v33 = vstv %s337_s25 }
  0x2d   : > { %712 = vmatprep.subr.bf16.mxu0 %v888_v0  ;;  %714 = vmatprep.mubr.msk.bf16.mxu0 %vm889_vm0, %v888_v0  ;;  %v342_v35 = vstv %s341_s26  ;;  %s1025_s20 = scalar_lea.hbm %s1074_s5, %s750_s16  ;;  %s1030_s30 = scalar_lea.sflag [#allocation6], %s203_s0 }
  0x2e   : > { %718 = vmatprep.subr.bf16.mxu1 %v888_v0  ;;  %720 = vmatprep.mubr.msk.bf16.mxu1 %vm889_vm0, %v888_v0  ;;  %s749_s14 = smul.u32 12, %s980_s13  ;;  %s698_s15 = sshll.u32 %s980_s13, 3  ;;  %v445_v42 = vstv %s682_s8 }
  0x2f   : > { %s215_s18 = scalar_lea.vmem %s1072_s3, %s698_s15  ;;  %s220_s24 = scalar_lea.vmem %s1073_s4, %s698_s15  ;;  %v449_v45 = vstv %s683_s9 }
  0x30   : > { %s210_s21 = scalar_lea.vmem %s1071_s2, %s749_s14  ;;  %v796_v10 = vld [vmem:[%s215_s18] sm:$0xff]   ;;  %s1011_s13 = scalar_lea.vmem [#allocation5], %s748_s6 }
  0x31   : > { %v226_v1 = vld [vmem:[%s210_s21] sm:$0x3]  ;;  %v227_v2 = vld [vmem:[%s210_s21 + $0x2] sm:$0x3]  ;;  %v677_v3 = vld [vmem:[%s210_s21 + $0x4] sm:$0x3] }
  0x32   : > { %v228_v4 = vunpack.c.l.u8.bf16 %v226_v1  ;;  %v229_v5 = vunpack.c.l.u8.bf16 %v227_v2  ;;  %v678_v6 = vld [vmem:[%s210_s21 + $0x6] sm:$0x3]  ;;  %v350_v7 = vunpack.c.l.u8.bf16 %v677_v3  ;;  %v686_v12 = vld [vmem:[%s210_s21 + $0x8] sm:$0x3]  ;;  %v687_v13 = vld [vmem:[%s210_s21 + $0xa] sm:$0x3] }
  0x33   : > { %v351_v8 = vunpack.c.l.u8.bf16 %v678_v6  ;;  %v458_v14 = vunpack.c.l.u8.bf16 %v686_v12  ;;  %v459_v15 = vunpack.c.l.u8.bf16 %v687_v13  ;;  %v797_v17 = vld [vmem:[%s220_s24] sm:$0xff]   ;;  %s691_s14 = sld [smem:[#allocation3 + $0x2]]  ;;  %s577_s17 = sshll.u32 %s1011_s13, 4  ;;  %s1020_s17 = int_to_ptr.vmem [resolvable:$true] %s577_s17 }
  0x34   : > { %v673_v9 = vcombine.low %v228_v4, %v229_v5  ;;  %719 = vmatpush3.bf16.msra.mxu1 %v797_v17  ;;  %s692_s15 = sld [smem:[#allocation4 + $0x2]]  ;;  %s822_s21 = scalar_lea.vmem %s1020_s17, 768 }
  0x35   : > { %v679_v11 = vcombine.low %v350_v7, %v351_v8  ;;  %v688_v16 = vcombine.low %v458_v14, %v459_v15  ;;  %730 = vmatprep.subr.bf16.mxu1 %v888_v0  ;;  %p823_p7 = scmp.ne.s32.totalorder %s1020_s17, %s822_s21  ;;  %s828_s24 = scalar_lea.vmem %s827_s23, 1536 }
  0x36   : > { %713 = vmatpush3.bf16.msra.mxu0 %v673_v9  ;;  %p829_p10 = scmp.lt.s32.totalorder %s1020_s17, %s827_s23  ;;  %p830_p11 = scmp.lt.s32.totalorder %s828_s24, %s822_s21 }
  0x37   : > { %724 = vmatprep.subr.bf16.mxu0 %v888_v0  ;;  %p824_p8 = pnand %p823_p7, %p967_p1 }
  0x38   : > { %p831_p12 = por %p830_p11, %p829_p10 }
  0x39   : > { %715 = vmatmul.mubr.msk.bf16.vlgmr.msra.gmra.mxu0 %vm241_vm1, %v796_v10  ;;  %v553_v52 = vstv %s691_s14  ;;  %p825_p9 = pneg %p824_p8 }
  0x3a   : > { %725 = vmatpush3.bf16.msra.mxu0 %v679_v11  ;;  %726 = vmatprep.mubr.msk.bf16.mxu0 %vm889_vm0, %v888_v0  ;;  %v557_v55 = vstv %s692_s15 }
  0x3b   : > { %736 = vmatprep.subr.bf16.mxu0 %v888_v0  ;;  %p832_p13 = pnand %p831_p12, %p825_p9 }
  0x41   : > { %727 = vmatmul.mubr.msk.bf16.vlgmr.msra.gmra.mxu0 %vm241_vm1, %v796_v10 }
  0x42   : > { %737 = vmatpush3.bf16.msra.mxu0 %v688_v16  ;;  %738 = vmatprep.mubr.msk.bf16.mxu0 %vm889_vm0, %v888_v0 }
  0x49   : > { %739 = vmatmul.mubr.msk.bf16.vlgmr.msra.gmra.mxu0 %vm241_vm1, %v796_v10 }
  0xf9   : > { %v279_v18 = vpop.f32.mrf.mxu0 }
  0xfb   : > { %v716_v19 = vpop.f32.mrf.mxu0 }
  0xfd   : > { %v282_v20 = vpop.f32.mrf.mxu0 }
  0xfe   : > { %v286_v21 = vpack.c.bf16 %v282_v20, %v279_v18 }
  0xff   : > { %v717_v22 = vpop.f32.mrf.mxu0 }
 0x100   : > { %721 = vmatmul.mubr.msk.bf16.vlgmr.msra.gmra.mxu1 %vm241_vm1, %v286_v21 }
 0x101   : > { %v392_v23 = vpop.f32.mrf.mxu0  ;;  %731 = vmatpush3.bf16.msra.mxu1 %v797_v17  ;;  %732 = vmatprep.mubr.msk.bf16.mxu1 %vm889_vm0, %v888_v0 }
 0x102   : > { %742 = vmatprep.subr.bf16.mxu1 %v888_v0 }
 0x103   : > { %v728_v24 = vpop.f32.mrf.mxu0 }
 0x105   : > { %v395_v25 = vpop.f32.mrf.mxu0 }
 0x106   : > { %v399_v26 = vpack.c.bf16 %v395_v25, %v392_v23 }
 0x107   : > { %v729_v27 = vpop.f32.mrf.mxu0 }
 0x108   : > { %733 = vmatmul.mubr.msk.bf16.vlgmr.msra.gmra.mxu1 %vm241_vm1, %v399_v26 }
 0x109   : > { %v500_v28 = vpop.f32.mrf.mxu0  ;;  %743 = vmatpush3.bf16.msra.mxu1 %v797_v17  ;;  %744 = vmatprep.mubr.msk.bf16.mxu1 %vm889_vm0, %v888_v0 }
 0x10b   : > { %v740_v29 = vpop.f32.mrf.mxu0 }
 0x10d   : > { %v503_v30 = vpop.f32.mrf.mxu0 }
 0x10e   : > { %v507_v31 = vpack.c.bf16 %v503_v30, %v500_v28 }
 0x10f   : > { %v741_v32 = vpop.f32.mrf.mxu0 }
 0x110   : > { %745 = vmatmul.mubr.msk.bf16.vlgmr.msra.gmra.mxu1 %vm241_vm1, %v507_v31 }
 0x1c0   : > { %v330_v34 = vpop.f32.mrf.mxu1 }
 0x1c1   : > { %v339_v36 = vmul.f32 %v338_v33, %v330_v34 }
 0x1c2   : > { %v722_v37 = vpop.f32.mrf.mxu1 }
 0x1c3   : > { %v343_v38 = vadd.f32 %v342_v35, %v339_v36 }
 0x1c4   : > { %v333_v39 = vpop.f32.mrf.mxu1 }
 0x1c5   : > { %345 = vst [vmem:[%s1011_s13] sm:$0xff] %v343_v38  ;;  %v340_v40 = vmul.f32 %v338_v33, %v333_v39 }
 0x1c6   : > { %v723_v41 = vpop.f32.mrf.mxu1 }
 0x1c7   : > { %v344_v43 = vadd.f32 %v342_v35, %v340_v40 }
 0x1c8   : > { %v437_v44 = vpop.f32.mrf.mxu1 }
 0x1c9   : > { %346 = vst [vmem:[%s1011_s13 + $0x8] sm:$0xff] %v344_v43  ;;  %v446_v46 = vmul.f32 %v445_v42, %v437_v44 }
 0x1ca   : > { %v734_v47 = vpop.f32.mrf.mxu1 }
 0x1cb   : > { %v450_v48 = vadd.f32 %v449_v45, %v446_v46 }
 0x1cc   : > { %v440_v49 = vpop.f32.mrf.mxu1 }
 0x1cd   : > { %684 = vst [vmem:[%s1011_s13 + $0x10] sm:$0xff] %v450_v48  ;;  %v447_v50 = vmul.f32 %v445_v42, %v440_v49 }
 0x1ce   : > { %v735_v51 = vpop.f32.mrf.mxu1 }
 0x1cf   : > { %v451_v53 = vadd.f32 %v449_v45, %v447_v50 }
 0x1d0   : > { %v545_v54 = vpop.f32.mrf.mxu1 }
 0x1d1   : > { %685 = vst [vmem:[%s1011_s13 + $0x18] sm:$0xff] %v451_v53  ;;  %v554_v56 = vmul.f32 %v553_v52, %v545_v54 }
 0x1d2   : > { %v746_v57 = vpop.f32.mrf.mxu1 }
 0x1d3   : > { %v558_v58 = vadd.f32 %v557_v55, %v554_v56 }
 0x1d4   : > { %v548_v59 = vpop.f32.mrf.mxu1 }
 0x1d5   : > { %693 = vst [vmem:[%s1011_s13 + $0x20] sm:$0xff] %v558_v58  ;;  %v555_v60 = vmul.f32 %v553_v52, %v548_v59 }
 0x1d6   : > { %v747_v61 = vpop.f32.mrf.mxu1 }
 0x1d7   : > { %v559_v62 = vadd.f32 %v557_v55, %v555_v60 }
 0x1d9   : > { %694 = vst [vmem:[%s1011_s13 + $0x28] sm:$0xff] %v559_v62 }
 0x1da   : > { %835 = shalt.err (!%p832_p13)
}
 0x1db   : > { %s836_s25 = scalar_lea.hbm %s1025_s20, 768  ;;  %s840_s6 = scalar_lea.hbm %s1074_s5, 1536 }
 0x1dc   : > { %p837_p0 = scmp.ne.s32.totalorder %s1025_s20, %s836_s25  ;;  %p841_p5 = scmp.lt.s32.totalorder %s1025_s20, %s1074_s5 }
 0x1dd   : > { %p842_p6 = scmp.lt.s32.totalorder %s840_s6, %s836_s25 }
 0x1de   : > { %p838_p3 = pnand %p837_p0, %p967_p1 }
 0x1df   : > { %p843_p7 = por %p842_p6, %p841_p5 }
 0x1e0   : > { %p839_p4 = pneg %p838_p3 }
 0x1e2   : > { %p844_p8 = pnand %p843_p7, %p839_p4 }
 0x1e4   : > { %847 = shalt.err (!%p844_p8)
}
 0x1e5   : > { %s891_s13 = smov 128   ;;  %s892_s14 = smov 8  }
 0x1e6   : > { %751 = dma.vmem_to_hbm [thread:$0]  (%p967_p1), %s1020_s17, 768, %s1025_s20, %s1030_s30, %s891_s13, %s891_s13, %s892_s14  }
 0x1e7 PF: > { %p757_p9 = scmp.ge.s32.totalorder %s884_s29, 2  ;;  %s592_s15 = sand.u32 1, %s872_s1  }
 0x1e8   : > { %s593_s16 = scalar_lea.sflag [#allocation6], %s592_s15 }
 0x1e9   : > { %p754_p10 = pnand %p757_p9, %p971_p2 }
 0x1eb   : > { %p755_p11 = pneg %p754_p10 }
 0x1ed   : > { %867 = dma.done.wait (%p755_p11), %s593_s16, 768  }
 0x1ee   : > { %869 = vsyncadd (%p755_p11), %s593_s16, 4294966528  ;;  %p25_p12 = scmp.ge.s32.totalorder %s954_s7, 4   ;;  %s1078_s1 = smov %s876_s27 }
 0x1ef   : > { %s1079_s27 = smov %s880_s28  ;;  %s1080_s28 = smov %s965_s10 }
 0x1f0   : > { %s1081_s29 = smov %s954_s7  ;;  %27 = sbr.rel (!%p25_p12) target bundleno = 28 (0x1c), region = 77 }
 0x1f5   :  { %598 = vsyncpa [#allocation6], 1 }
 0x1f6   :  { %600 = vsyncpa [#allocation6 + $0x1], 1 }

</bundles_post_ra>
